<compile_context>
chip_gen: v7x
topology: tpu7x:2x2x1
jax: 0.10.0
libtpu: 0.0.40
codegen_flags: <defaults>
</compile_context>

<pallas_src>
import jax
import jax.numpy as jnp
from jax import lax
from jax.experimental import pallas as pl
from jax.experimental.pallas import tpu as pltpu

BATCH = 4          # global `batch_size` in the reference module
IMG_FEAT = 2048    # hardcoded in `self.fcr = nn.Linear(2048, in_dim)`
LANES = 128


def _round_up(x, m):
    return (x + m - 1) // m * m


def _lstm_recurrence_kernel(xg_ref, w_hh_t_ref, h_out_ref):
    """Serial LSTM recurrence only (everything else is pre/post-computed).

    xg_ref    : (S, B, 4*out_pad) f32   precomputed x@W_ih.T + b_ih + b_hh,
                                        gate order (i, f, o, g), 128-padded
    w_hh_t_ref: (out_pad, 4*out_pad) bf16  W_hh.T, same reorder + zero padding
    h_out_ref : (S, B, out_pad)   bf16  hidden state after each step
    """
    S, B, four_out = xg_ref.shape
    out_pad = four_out // 4
    w_hh_t = w_hh_t_ref[...]                      # resident for the whole loop

    def step(s, carry):
        h, c = carry
        gates = xg_ref[s] + jnp.dot(
            h.astype(w_hh_t.dtype), w_hh_t, preferred_element_type=jnp.float32)
        # All slice boundaries are multiples of 128 lanes -> unmasked VPU ops.
        sig = jax.nn.sigmoid(gates[:, : 3 * out_pad])   # i | f | o (contiguous)
        i_g = sig[:, :out_pad]
        f_g = sig[:, out_pad:2 * out_pad]
        o_g = sig[:, 2 * out_pad:]
        g_g = jnp.tanh(gates[:, 3 * out_pad:])
        c_new = f_g * c + i_g * g_g
        h_new = o_g * jnp.tanh(c_new)
        h_out_ref[s] = h_new.astype(h_out_ref.dtype)    # lane-dense bf16 store
        return (h_new, c_new)

    h0 = jnp.zeros((B, out_pad), jnp.float32)
    c0 = jnp.zeros((B, out_pad), jnp.float32)
    lax.fori_loop(0, S, step, (h0, c0), unroll=(True if S <= 16 else 4))


def _bf16_dot(a, b):
    """a[..., K] @ b[K, N] with bf16 MXU inputs, f32 accumulation."""
    return lax.dot_general(
        a.astype(jnp.bfloat16), b.astype(jnp.bfloat16),
        dimension_numbers=(((a.ndim - 1,), (0,)), ((), ())),
        preferred_element_type=jnp.float32)


def preprocess_params(params):
    """One-time (outside jit) gate reorder (i,f,g,o)->(i,f,o,g), 128-lane
    padding, transposes and bf16 casts.  Static slices + concat, no gather."""
    out_dim = params["w_hh"].shape[1]
    out_pad = _round_up(out_dim, LANES)
    pad = out_pad - out_dim

    def split_gates(w):          # rows in PyTorch order (i, f, g, o)
        return (w[:out_dim], w[out_dim:2 * out_dim],
                w[2 * out_dim:3 * out_dim], w[3 * out_dim:])

    def pad_rows(x):
        if pad == 0:
            return x
        return jnp.pad(x, [(0, pad)] + [(0, 0)] * (x.ndim - 1))

    def reorder_pad(w):          # -> (4*out_pad, ...) in order (i, f, o, g)
        i, f, g, o = split_gates(w)
        return jnp.concatenate([pad_rows(i), pad_rows(f),
                                pad_rows(o), pad_rows(g)], axis=0)

    w_ih_p = reorder_pad(params["w_ih"])                       # (4*out_pad, in)
    bias_p = reorder_pad(params["b_ih"] + params["b_hh"])      # (4*out_pad,)
    w_hh_p = reorder_pad(params["w_hh"])                       # (4*out_pad, out)
    if pad:
        w_hh_p = jnp.pad(w_hh_p, ((0, 0), (0, pad)))           # (4*out_pad, out_pad)

    return {
        "w_ih_t": w_ih_p.T.astype(jnp.bfloat16),               # (in, 4*out_pad)
        "bias": bias_p.astype(jnp.float32),                    # (4*out_pad,)
        "w_hh_t": w_hh_p.T.astype(jnp.bfloat16),               # (out_pad, 4*out_pad)
        "fc_w_t": params["fc_w"].T.astype(jnp.bfloat16),       # (vocab, in)
        "fc_b": params["fc_b"].astype(jnp.float32),
        "fcr_w_t": params["fcr_w"].T.astype(jnp.bfloat16),     # (2048, in)
        "fcr_b": params["fcr_b"].astype(jnp.float32),
        "fc2_w_t": params["fc2_w"].T.astype(jnp.bfloat16),     # (out, vocab)
        "fc2_b": params["fc2_b"].astype(jnp.float32),
    }


def sentence_g_forward(images, sentences_h, prep):
    """images: (B, 2048) f32; sentences_h: (B, T, U, V) f32 (PyTorch layout)."""
    B, T, U, V = sentences_h.shape
    out_dim = prep["fc2_w_t"].shape[0]          # static at trace time
    out_pad = prep["w_hh_t"].shape[0]
    S = T * (U - 1)
    bias = prep["bias"]

    # ---- hoisted, batched input-side projections (computed once) ----
    # t == 0: fcr(images) is the LSTM input for every u at t == 0.
    x0 = _bf16_dot(images, prep["fcr_w_t"]) + prep["fcr_b"]            # (B, in)
    g0 = _bf16_dot(x0, prep["w_ih_t"]) + bias                          # (B, 4*out_pad)
    xg0 = jnp.broadcast_to(g0[None], (U - 1, B, 4 * out_pad))

    if T > 1:
        sent = sentences_h[:, 1:, 1:, :]                               # (B,T-1,U-1,V)
        xs = _bf16_dot(sent, prep["fc_w_t"]) + prep["fc_b"]            # (B,T-1,U-1,in)
        gs = _bf16_dot(xs, prep["w_ih_t"]) + bias                      # (B,T-1,U-1,4op)
        gs = jnp.transpose(gs, (1, 2, 0, 3)).reshape(
            (T - 1) * (U - 1), B, 4 * out_pad)
        xg = jnp.concatenate([xg0, gs], axis=0)                        # (S, B, 4*out_pad)
    else:
        xg = xg0
    xg = xg.astype(jnp.float32)

    # ---- serial recurrence: one Pallas grid step, fori_loop inside ----
    h_states = pl.pallas_call(
        _lstm_recurrence_kernel,
        out_shape=jax.ShapeDtypeStruct((S, B, out_pad), jnp.bfloat16),
        grid=(1,),
        in_specs=[
            pl.BlockSpec((S, B, 4 * out_pad), lambda i: (0, 0, 0)),
            pl.BlockSpec((out_pad, 4 * out_pad), lambda i: (0, 0)),
        ],
        out_specs=pl.BlockSpec((S, B, out_pad), lambda i: (0, 0, 0)),
        compiler_params=pltpu.CompilerParams(
            dimension_semantics=("arbitrary",),
            # Actual footprint (xg + W_hh.T + h_out, double-buffered) is well
            # under 1 MiB at these shapes; 8 MiB leaves ample headroom while
            # staying far below v7x's 64 MiB physical VMEM.
            vmem_limit_bytes=8 * 1024 * 1024),
    )(xg, prep["w_hh_t"])

    # ---- deferred fc2: one big (S*B, out) @ (out, V) matmul ----
    h_flat = h_states[:, :, :out_dim].reshape(S * B, out_dim)          # bf16
    words = _bf16_dot(h_flat, prep["fc2_w_t"]) + prep["fc2_b"]         # (S*B, V)
    words = words.reshape(T, U - 1, B, V).transpose(2, 0, 1, 3)        # (B,T,U-1,V)
    word_list = jnp.pad(words, ((0, 0), (0, 0), (1, 0), (0, 0)))       # u=0 stays 0
    return word_list


def init_params(key, vocab_dim, in_dim, out_dim):
    ks = jax.random.split(key, 10)
    s = 0.02
    w = lambda k, shape: (s * jax.random.normal(k, shape)).astype(jnp.float32)
    return {
        "fc_w":  w(ks[0], (in_dim, vocab_dim)),    "fc_b":  w(ks[1], (in_dim,)),
        "fc2_w": w(ks[2], (vocab_dim, out_dim)),   "fc2_b": w(ks[3], (vocab_dim,)),
        "fcr_w": w(ks[4], (in_dim, IMG_FEAT)),     "fcr_b": w(ks[5], (in_dim,)),
        "w_ih":  w(ks[6], (4 * out_dim, in_dim)),  "b_ih":  w(ks[7], (4 * out_dim,)),
        "w_hh":  w(ks[8], (4 * out_dim, out_dim)), "b_hh":  w(ks[9], (4 * out_dim,)),
    }


def reference_forward(images, sentences_h, params):
    """Pure-JAX f32 mirror of the PyTorch teacher-forcing loop."""
    B, T, U, V = sentences_h.shape
    out_dim = params["w_hh"].shape[1]
    h = jnp.zeros((B, out_dim), jnp.float32)
    c = jnp.zeros((B, out_dim), jnp.float32)
    word_list = jnp.zeros((B, T, U, V), jnp.float32)
    for t in range(T):
        for u in range(1, U):
            if t == 0:
                x = images @ params["fcr_w"].T + params["fcr_b"]
            else:
                x = sentences_h[:, t, u, :] @ params["fc_w"].T + params["fc_b"]
            gates = (x @ params["w_ih"].T + params["b_ih"]
                     + h @ params["w_hh"].T + params["b_hh"])
            i_g, f_g, g_g, o_g = jnp.split(gates, 4, axis=1)
            c = jax.nn.sigmoid(f_g) * c + jax.nn.sigmoid(i_g) * jnp.tanh(g_g)
            h = jax.nn.sigmoid(o_g) * jnp.tanh(c)
            word = h @ params["fc2_w"].T + params["fc2_b"]
            word_list = word_list.at[:, t, u, :].set(word)
    return word_list


if __name__ == "__main__":
    vocab_dim, in_dim, out_dim = 128, 64, 64   # small stand-ins (module default vocab=3266)
    T, U = 2, 4                                # max(ns), max(nw)

    key = jax.random.PRNGKey(0)
    k_img, k_sent, k_par = jax.random.split(key, 3)
    images = jax.random.normal(k_img, (BATCH, IMG_FEAT), jnp.float32)
    sentences_h = jax.random.normal(k_sent, (BATCH, T, U, vocab_dim), jnp.float32)
    params = init_params(k_par, vocab_dim, in_dim, out_dim)

    prep = preprocess_params(params)           # one-time weight prep, outside jit
    fwd = jax.jit(sentence_g_forward)
    word_list = jax.block_until_ready(fwd(images, sentences_h, prep))
    ref = reference_forward(images, sentences_h, params)

    assert word_list.shape == (BATCH, T, U, vocab_dim), word_list.shape
    err = float(jnp.max(jnp.abs(word_list - ref)))
    assert err < 2e-2, err   # bf16 MXU inputs, f32 accumulation
    print("KERNEL_OK")
</pallas_src>

<mosaic_0001>
module attributes {stable_mosaic.version = 11 : i64} {
  func.func @_lstm_recurrence_kernel(%arg0: i32, %arg1: memref<6x4x512xf32, #tpu.memory_space<vmem>>, %arg2: memref<128x512xbf16, #tpu.memory_space<vmem>>, %arg3: memref<6x4x128xbf16, #tpu.memory_space<vmem>>) attributes {dimension_semantics = [#tpu.dimension_semantics<arbitrary>], iteration_bounds = array<i64: 1>, scalar_prefetch = 0 : i64, scratch_operands = 0 : i64, tpu.core_type = #tpu.core_type<tc>, window_params = [{pipeline_mode = #tpu.pipeline_mode<synchronous>, transform_indices = @transform_0, window_bounds = array<i64: 6, 4, 512>}, {pipeline_mode = #tpu.pipeline_mode<synchronous>, transform_indices = @transform_1, window_bounds = array<i64: 128, 512>}, {pipeline_mode = #tpu.pipeline_mode<synchronous>, transform_indices = @transform_2, window_bounds = array<i64: 6, 4, 128>}]} {
    %c0 = arith.constant 0 : index
    %c0_0 = arith.constant 0 : index
    %0 = vector.load %arg2[%c0, %c0_0] : memref<128x512xbf16, #tpu.memory_space<vmem>>, vector<128x512xbf16>
    %cst = arith.constant 0.000000e+00 : f32
    %1 = vector.broadcast %cst : f32 to vector<4x128xf32>
    %cst_1 = arith.constant 0.000000e+00 : f32
    %2 = vector.broadcast %cst_1 : f32 to vector<4x128xf32>
    %c0_i32 = arith.constant 0 : i32
    %3 = arith.index_cast %c0_i32 : i32 to index
    %c0_2 = arith.constant 0 : index
    %c0_3 = arith.constant 0 : index
    %4 = vector.load %arg1[%3, %c0_2, %c0_3] : memref<6x4x512xf32, #tpu.memory_space<vmem>>, vector<1x4x512xf32>
    %5 = vector.shape_cast %4 : vector<1x4x512xf32> to vector<4x512xf32>
    %6 = arith.truncf %1 : vector<4x128xf32> to vector<4x128xbf16>
    %cst_4 = arith.constant dense<0.000000e+00> : vector<4x512xf32>
    %7 = tpu.matmul %6, %0, %cst_4 {dimension_numbers = #tpu.dot_dimension_numbers<[1], [0], [0], [1], [0, 0, 1, 1], [], []>} : vector<4x128xbf16>, vector<128x512xbf16>, vector<4x512xf32> -> vector<4x512xf32>
    %8 = arith.addf %5, %7 : vector<4x512xf32>
    %9 = vector.extract_strided_slice %8 {offsets = [0, 0], sizes = [4, 384], strides = [1, 1]} : vector<4x512xf32> to vector<4x384xf32>
    %10 = arith.negf %9 : vector<4x384xf32>
    %11 = math.exp %10 : vector<4x384xf32>
    %cst_5 = arith.constant 1.000000e+00 : f32
    %12 = vector.broadcast %cst_5 : f32 to vector<4x384xf32>
    %13 = arith.addf %12, %11 : vector<4x384xf32>
    %14 = arith.divf %12, %13 : vector<4x384xf32>
    %15 = vector.extract_strided_slice %14 {offsets = [0, 0], sizes = [4, 128], strides = [1, 1]} : vector<4x384xf32> to vector<4x128xf32>
    %16 = vector.extract_strided_slice %14 {offsets = [0, 128], sizes = [4, 128], strides = [1, 1]} : vector<4x384xf32> to vector<4x128xf32>
    %17 = vector.extract_strided_slice %14 {offsets = [0, 256], sizes = [4, 128], strides = [1, 1]} : vector<4x384xf32> to vector<4x128xf32>
    %18 = vector.extract_strided_slice %8 {offsets = [0, 384], sizes = [4, 128], strides = [1, 1]} : vector<4x512xf32> to vector<4x128xf32>
    %19 = math.tanh %18 : vector<4x128xf32>
    %20 = arith.mulf %16, %2 : vector<4x128xf32>
    %21 = arith.mulf %15, %19 : vector<4x128xf32>
    %22 = arith.addf %20, %21 : vector<4x128xf32>
    %23 = math.tanh %22 : vector<4x128xf32>
    %24 = arith.mulf %17, %23 : vector<4x128xf32>
    %25 = arith.truncf %24 : vector<4x128xf32> to vector<4x128xbf16>
    %26 = arith.index_cast %c0_i32 : i32 to index
    %c0_6 = arith.constant 0 : index
    %c0_7 = arith.constant 0 : index
    %27 = vector.load %arg3[%26, %c0_6, %c0_7] : memref<6x4x128xbf16, #tpu.memory_space<vmem>>, vector<1x4x128xbf16>
    %28 = vector.shape_cast %27 : vector<1x4x128xbf16> to vector<4x128xbf16>
    %29 = vector.shape_cast %25 : vector<4x128xbf16> to vector<1x4x128xbf16>
    tpu.vector_store %arg3[%26, %c0_6, %c0_7], %29 {strides = array<i32>} : memref<6x4x128xbf16, #tpu.memory_space<vmem>>, vector<1x4x128xbf16>,
    %c1_i32 = arith.constant 1 : i32
    %30 = arith.index_cast %c1_i32 : i32 to index
    %c0_8 = arith.constant 0 : index
    %c0_9 = arith.constant 0 : index
    %31 = vector.load %arg1[%30, %c0_8, %c0_9] : memref<6x4x512xf32, #tpu.memory_space<vmem>>, vector<1x4x512xf32>
    %32 = vector.shape_cast %31 : vector<1x4x512xf32> to vector<4x512xf32>
    %33 = arith.truncf %24 : vector<4x128xf32> to vector<4x128xbf16>
    %cst_10 = arith.constant dense<0.000000e+00> : vector<4x512xf32>
    %34 = tpu.matmul %33, %0, %cst_10 {dimension_numbers = #tpu.dot_dimension_numbers<[1], [0], [0], [1], [0, 0, 1, 1], [], []>} : vector<4x128xbf16>, vector<128x512xbf16>, vector<4x512xf32> -> vector<4x512xf32>
    %35 = arith.addf %32, %34 : vector<4x512xf32>
    %36 = vector.extract_strided_slice %35 {offsets = [0, 0], sizes = [4, 384], strides = [1, 1]} : vector<4x512xf32> to vector<4x384xf32>
    %37 = arith.negf %36 : vector<4x384xf32>
    %38 = math.exp %37 : vector<4x384xf32>
    %cst_11 = arith.constant 1.000000e+00 : f32
    %39 = vector.broadcast %cst_11 : f32 to vector<4x384xf32>
    %40 = arith.addf %39, %38 : vector<4x384xf32>
    %41 = arith.divf %39, %40 : vector<4x384xf32>
    %42 = vector.extract_strided_slice %41 {offsets = [0, 0], sizes = [4, 128], strides = [1, 1]} : vector<4x384xf32> to vector<4x128xf32>
    %43 = vector.extract_strided_slice %41 {offsets = [0, 128], sizes = [4, 128], strides = [1, 1]} : vector<4x384xf32> to vector<4x128xf32>
    %44 = vector.extract_strided_slice %41 {offsets = [0, 256], sizes = [4, 128], strides = [1, 1]} : vector<4x384xf32> to vector<4x128xf32>
    %45 = vector.extract_strided_slice %35 {offsets = [0, 384], sizes = [4, 128], strides = [1, 1]} : vector<4x512xf32> to vector<4x128xf32>
    %46 = math.tanh %45 : vector<4x128xf32>
    %47 = arith.mulf %43, %22 : vector<4x128xf32>
    %48 = arith.mulf %42, %46 : vector<4x128xf32>
    %49 = arith.addf %47, %48 : vector<4x128xf32>
    %50 = math.tanh %49 : vector<4x128xf32>
    %51 = arith.mulf %44, %50 : vector<4x128xf32>
    %52 = arith.truncf %51 : vector<4x128xf32> to vector<4x128xbf16>
    %53 = arith.index_cast %c1_i32 : i32 to index
    %c0_12 = arith.constant 0 : index
    %c0_13 = arith.constant 0 : index
    %54 = vector.load %arg3[%53, %c0_12, %c0_13] : memref<6x4x128xbf16, #tpu.memory_space<vmem>>, vector<1x4x128xbf16>
    %55 = vector.shape_cast %54 : vector<1x4x128xbf16> to vector<4x128xbf16>
    %56 = vector.shape_cast %52 : vector<4x128xbf16> to vector<1x4x128xbf16>
    tpu.vector_store %arg3[%53, %c0_12, %c0_13], %56 {strides = array<i32>} : memref<6x4x128xbf16, #tpu.memory_space<vmem>>, vector<1x4x128xbf16>,
    %c2_i32 = arith.constant 2 : i32
    %57 = arith.index_cast %c2_i32 : i32 to index
    %c0_14 = arith.constant 0 : index
    %c0_15 = arith.constant 0 : index
    %58 = vector.load %arg1[%57, %c0_14, %c0_15] : memref<6x4x512xf32, #tpu.memory_space<vmem>>, vector<1x4x512xf32>
    %59 = vector.shape_cast %58 : vector<1x4x512xf32> to vector<4x512xf32>
    %60 = arith.truncf %51 : vector<4x128xf32> to vector<4x128xbf16>
    %cst_16 = arith.constant dense<0.000000e+00> : vector<4x512xf32>
    %61 = tpu.matmul %60, %0, %cst_16 {dimension_numbers = #tpu.dot_dimension_numbers<[1], [0], [0], [1], [0, 0, 1, 1], [], []>} : vector<4x128xbf16>, vector<128x512xbf16>, vector<4x512xf32> -> vector<4x512xf32>
    %62 = arith.addf %59, %61 : vector<4x512xf32>
    %63 = vector.extract_strided_slice %62 {offsets = [0, 0], sizes = [4, 384], strides = [1, 1]} : vector<4x512xf32> to vector<4x384xf32>
    %64 = arith.negf %63 : vector<4x384xf32>
    %65 = math.exp %64 : vector<4x384xf32>
    %cst_17 = arith.constant 1.000000e+00 : f32
    %66 = vector.broadcast %cst_17 : f32 to vector<4x384xf32>
    %67 = arith.addf %66, %65 : vector<4x384xf32>
    %68 = arith.divf %66, %67 : vector<4x384xf32>
    %69 = vector.extract_strided_slice %68 {offsets = [0, 0], sizes = [4, 128], strides = [1, 1]} : vector<4x384xf32> to vector<4x128xf32>
    %70 = vector.extract_strided_slice %68 {offsets = [0, 128], sizes = [4, 128], strides = [1, 1]} : vector<4x384xf32> to vector<4x128xf32>
    %71 = vector.extract_strided_slice %68 {offsets = [0, 256], sizes = [4, 128], strides = [1, 1]} : vector<4x384xf32> to vector<4x128xf32>
    %72 = vector.extract_strided_slice %62 {offsets = [0, 384], sizes = [4, 128], strides = [1, 1]} : vector<4x512xf32> to vector<4x128xf32>
    %73 = math.tanh %72 : vector<4x128xf32>
    %74 = arith.mulf %70, %49 : vector<4x128xf32>
    %75 = arith.mulf %69, %73 : vector<4x128xf32>
    %76 = arith.addf %74, %75 : vector<4x128xf32>
    %77 = math.tanh %76 : vector<4x128xf32>
    %78 = arith.mulf %71, %77 : vector<4x128xf32>
    %79 = arith.truncf %78 : vector<4x128xf32> to vector<4x128xbf16>
    %80 = arith.index_cast %c2_i32 : i32 to index
    %c0_18 = arith.constant 0 : index
    %c0_19 = arith.constant 0 : index
    %81 = vector.load %arg3[%80, %c0_18, %c0_19] : memref<6x4x128xbf16, #tpu.memory_space<vmem>>, vector<1x4x128xbf16>
    %82 = vector.shape_cast %81 : vector<1x4x128xbf16> to vector<4x128xbf16>
    %83 = vector.shape_cast %79 : vector<4x128xbf16> to vector<1x4x128xbf16>
    tpu.vector_store %arg3[%80, %c0_18, %c0_19], %83 {strides = array<i32>} : memref<6x4x128xbf16, #tpu.memory_space<vmem>>, vector<1x4x128xbf16>,
    %c3_i32 = arith.constant 3 : i32
    %84 = arith.index_cast %c3_i32 : i32 to index
    %c0_20 = arith.constant 0 : index
    %c0_21 = arith.constant 0 : index
    %85 = vector.load %arg1[%84, %c0_20, %c0_21] : memref<6x4x512xf32, #tpu.memory_space<vmem>>, vector<1x4x512xf32>
    %86 = vector.shape_cast %85 : vector<1x4x512xf32> to vector<4x512xf32>
    %87 = arith.truncf %78 : vector<4x128xf32> to vector<4x128xbf16>
    %cst_22 = arith.constant dense<0.000000e+00> : vector<4x512xf32>
    %88 = tpu.matmul %87, %0, %cst_22 {dimension_numbers = #tpu.dot_dimension_numbers<[1], [0], [0], [1], [0, 0, 1, 1], [], []>} : vector<4x128xbf16>, vector<128x512xbf16>, vector<4x512xf32> -> vector<4x512xf32>
    %89 = arith.addf %86, %88 : vector<4x512xf32>
    %90 = vector.extract_strided_slice %89 {offsets = [0, 0], sizes = [4, 384], strides = [1, 1]} : vector<4x512xf32> to vector<4x384xf32>
    %91 = arith.negf %90 : vector<4x384xf32>
    %92 = math.exp %91 : vector<4x384xf32>
    %cst_23 = arith.constant 1.000000e+00 : f32
    %93 = vector.broadcast %cst_23 : f32 to vector<4x384xf32>
    %94 = arith.addf %93, %92 : vector<4x384xf32>
    %95 = arith.divf %93, %94 : vector<4x384xf32>
    %96 = vector.extract_strided_slice %95 {offsets = [0, 0], sizes = [4, 128], strides = [1, 1]} : vector<4x384xf32> to vector<4x128xf32>
    %97 = vector.extract_strided_slice %95 {offsets = [0, 128], sizes = [4, 128], strides = [1, 1]} : vector<4x384xf32> to vector<4x128xf32>
    %98 = vector.extract_strided_slice %95 {offsets = [0, 256], sizes = [4, 128], strides = [1, 1]} : vector<4x384xf32> to vector<4x128xf32>
    %99 = vector.extract_strided_slice %89 {offsets = [0, 384], sizes = [4, 128], strides = [1, 1]} : vector<4x512xf32> to vector<4x128xf32>
    %100 = math.tanh %99 : vector<4x128xf32>
    %101 = arith.mulf %97, %76 : vector<4x128xf32>
    %102 = arith.mulf %96, %100 : vector<4x128xf32>
    %103 = arith.addf %101, %102 : vector<4x128xf32>
    %104 = math.tanh %103 : vector<4x128xf32>
    %105 = arith.mulf %98, %104 : vector<4x128xf32>
    %106 = arith.truncf %105 : vector<4x128xf32> to vector<4x128xbf16>
    %107 = arith.index_cast %c3_i32 : i32 to index
    %c0_24 = arith.constant 0 : index
    %c0_25 = arith.constant 0 : index
    %108 = vector.load %arg3[%107, %c0_24, %c0_25] : memref<6x4x128xbf16, #tpu.memory_space<vmem>>, vector<1x4x128xbf16>
    %109 = vector.shape_cast %108 : vector<1x4x128xbf16> to vector<4x128xbf16>
    %110 = vector.shape_cast %106 : vector<4x128xbf16> to vector<1x4x128xbf16>
    tpu.vector_store %arg3[%107, %c0_24, %c0_25], %110 {strides = array<i32>} : memref<6x4x128xbf16, #tpu.memory_space<vmem>>, vector<1x4x128xbf16>,
    %c4_i32 = arith.constant 4 : i32
    %111 = arith.index_cast %c4_i32 : i32 to index
    %c0_26 = arith.constant 0 : index
    %c0_27 = arith.constant 0 : index
    %112 = vector.load %arg1[%111, %c0_26, %c0_27] : memref<6x4x512xf32, #tpu.memory_space<vmem>>, vector<1x4x512xf32>
    %113 = vector.shape_cast %112 : vector<1x4x512xf32> to vector<4x512xf32>
    %114 = arith.truncf %105 : vector<4x128xf32> to vector<4x128xbf16>
    %cst_28 = arith.constant dense<0.000000e+00> : vector<4x512xf32>
    %115 = tpu.matmul %114, %0, %cst_28 {dimension_numbers = #tpu.dot_dimension_numbers<[1], [0], [0], [1], [0, 0, 1, 1], [], []>} : vector<4x128xbf16>, vector<128x512xbf16>, vector<4x512xf32> -> vector<4x512xf32>
    %116 = arith.addf %113, %115 : vector<4x512xf32>
    %117 = vector.extract_strided_slice %116 {offsets = [0, 0], sizes = [4, 384], strides = [1, 1]} : vector<4x512xf32> to vector<4x384xf32>
    %118 = arith.negf %117 : vector<4x384xf32>
    %119 = math.exp %118 : vector<4x384xf32>
    %cst_29 = arith.constant 1.000000e+00 : f32
    %120 = vector.broadcast %cst_29 : f32 to vector<4x384xf32>
    %121 = arith.addf %120, %119 : vector<4x384xf32>
    %122 = arith.divf %120, %121 : vector<4x384xf32>
    %123 = vector.extract_strided_slice %122 {offsets = [0, 0], sizes = [4, 128], strides = [1, 1]} : vector<4x384xf32> to vector<4x128xf32>
    %124 = vector.extract_strided_slice %122 {offsets = [0, 128], sizes = [4, 128], strides = [1, 1]} : vector<4x384xf32> to vector<4x128xf32>
    %125 = vector.extract_strided_slice %122 {offsets = [0, 256], sizes = [4, 128], strides = [1, 1]} : vector<4x384xf32> to vector<4x128xf32>
    %126 = vector.extract_strided_slice %116 {offsets = [0, 384], sizes = [4, 128], strides = [1, 1]} : vector<4x512xf32> to vector<4x128xf32>
    %127 = math.tanh %126 : vector<4x128xf32>
    %128 = arith.mulf %124, %103 : vector<4x128xf32>
    %129 = arith.mulf %123, %127 : vector<4x128xf32>
    %130 = arith.addf %128, %129 : vector<4x128xf32>
    %131 = math.tanh %130 : vector<4x128xf32>
    %132 = arith.mulf %125, %131 : vector<4x128xf32>
    %133 = arith.truncf %132 : vector<4x128xf32> to vector<4x128xbf16>
    %134 = arith.index_cast %c4_i32 : i32 to index
    %c0_30 = arith.constant 0 : index
    %c0_31 = arith.constant 0 : index
    %135 = vector.load %arg3[%134, %c0_30, %c0_31] : memref<6x4x128xbf16, #tpu.memory_space<vmem>>, vector<1x4x128xbf16>
    %136 = vector.shape_cast %135 : vector<1x4x128xbf16> to vector<4x128xbf16>
    %137 = vector.shape_cast %133 : vector<4x128xbf16> to vector<1x4x128xbf16>
    tpu.vector_store %arg3[%134, %c0_30, %c0_31], %137 {strides = array<i32>} : memref<6x4x128xbf16, #tpu.memory_space<vmem>>, vector<1x4x128xbf16>,
    %c5_i32 = arith.constant 5 : i32
    %138 = arith.index_cast %c5_i32 : i32 to index
    %c0_32 = arith.constant 0 : index
    %c0_33 = arith.constant 0 : index
    %139 = vector.load %arg1[%138, %c0_32, %c0_33] : memref<6x4x512xf32, #tpu.memory_space<vmem>>, vector<1x4x512xf32>
    %140 = vector.shape_cast %139 : vector<1x4x512xf32> to vector<4x512xf32>
    %141 = arith.truncf %132 : vector<4x128xf32> to vector<4x128xbf16>
    %cst_34 = arith.constant dense<0.000000e+00> : vector<4x512xf32>
    %142 = tpu.matmul %141, %0, %cst_34 {dimension_numbers = #tpu.dot_dimension_numbers<[1], [0], [0], [1], [0, 0, 1, 1], [], []>} : vector<4x128xbf16>, vector<128x512xbf16>, vector<4x512xf32> -> vector<4x512xf32>
    %143 = arith.addf %140, %142 : vector<4x512xf32>
    %144 = vector.extract_strided_slice %143 {offsets = [0, 0], sizes = [4, 384], strides = [1, 1]} : vector<4x512xf32> to vector<4x384xf32>
    %145 = arith.negf %144 : vector<4x384xf32>
    %146 = math.exp %145 : vector<4x384xf32>
    %cst_35 = arith.constant 1.000000e+00 : f32
    %147 = vector.broadcast %cst_35 : f32 to vector<4x384xf32>
    %148 = arith.addf %147, %146 : vector<4x384xf32>
    %149 = arith.divf %147, %148 : vector<4x384xf32>
    %150 = vector.extract_strided_slice %149 {offsets = [0, 0], sizes = [4, 128], strides = [1, 1]} : vector<4x384xf32> to vector<4x128xf32>
    %151 = vector.extract_strided_slice %149 {offsets = [0, 128], sizes = [4, 128], strides = [1, 1]} : vector<4x384xf32> to vector<4x128xf32>
    %152 = vector.extract_strided_slice %149 {offsets = [0, 256], sizes = [4, 128], strides = [1, 1]} : vector<4x384xf32> to vector<4x128xf32>
    %153 = vector.extract_strided_slice %143 {offsets = [0, 384], sizes = [4, 128], strides = [1, 1]} : vector<4x512xf32> to vector<4x128xf32>
    %154 = math.tanh %153 : vector<4x128xf32>
    %155 = arith.mulf %151, %130 : vector<4x128xf32>
    %156 = arith.mulf %150, %154 : vector<4x128xf32>
    %157 = arith.addf %155, %156 : vector<4x128xf32>
    %158 = math.tanh %157 : vector<4x128xf32>
    %159 = arith.mulf %152, %158 : vector<4x128xf32>
    %160 = arith.truncf %159 : vector<4x128xf32> to vector<4x128xbf16>
    %161 = arith.index_cast %c5_i32 : i32 to index
    %c0_36 = arith.constant 0 : index
    %c0_37 = arith.constant 0 : index
    %162 = vector.load %arg3[%161, %c0_36, %c0_37] : memref<6x4x128xbf16, #tpu.memory_space<vmem>>, vector<1x4x128xbf16>
    %163 = vector.shape_cast %162 : vector<1x4x128xbf16> to vector<4x128xbf16>
    %164 = vector.shape_cast %160 : vector<4x128xbf16> to vector<1x4x128xbf16>
    tpu.vector_store %arg3[%161, %c0_36, %c0_37], %164 {strides = array<i32>} : memref<6x4x128xbf16, #tpu.memory_space<vmem>>, vector<1x4x128xbf16>,
    %c6_i32 = arith.constant 6 : i32
    return
  }
  func.func @transform_0(%arg0: i32) -> (i32, i32, i32) {
    %c0_i32 = arith.constant 0 : i32
    %c0_i32_0 = arith.constant 0 : i32
    %c0_i32_1 = arith.constant 0 : i32
    %c0_i32_2 = arith.constant 0 : i32
    return %c0_i32, %c0_i32_0, %c0_i32_1 : i32, i32, i32
  }
  func.func @transform_1(%arg0: i32) -> (i32, i32) {
    %c0_i32 = arith.constant 0 : i32
    %c0_i32_0 = arith.constant 0 : i32
    %c0_i32_1 = arith.constant 0 : i32
    return %c0_i32, %c0_i32_0 : i32, i32
  }
  func.func @transform_2(%arg0: i32) -> (i32, i32, i32) {
    %c0_i32 = arith.constant 0 : i32
    %c0_i32_0 = arith.constant 0 : i32
    %c0_i32_1 = arith.constant 0 : i32
    %c0_i32_2 = arith.constant 0 : i32
    return %c0_i32, %c0_i32_0, %c0_i32_1 : i32, i32, i32
  }
}

</mosaic_0001>

<bundles_post_ra>
// kernel: sentence_g_forward.1
= control target key start
LH: loop header
LB: loop body
LE: loop exit
PB: predicated region body
PF: predicated region fallthrough
CT: control target
= control target key end

     0   :  { %v1118_v1 = vmov 0   ;;  %s1570_s1 = inlined_call_operand.vmem [shape: bf16[128,512], index: 1, kind: input, shape index: {}]   ;;  %s1571_s0 = inlined_call_operand.vmem [shape: f32[6,4,512], index: 0, kind: input, shape index: {}]   ;;  %s1572_s2 = inlined_call_operand.vmem [shape: bf16[6,4,128], index: 2, kind: output, shape index: {}]  }
   0x1   :  { %v1137_v0 = vld [vmem:[%s1570_s1 + $0x4] ss:$16 sps:$4 sm:$0xff]   ;;  %238 = vmatprep.mubr.bf16.mxu0 %v1118_v1  ;;  %279 = vmatprep.mubr.bf16.mxu1 %v1118_v1  ;;  %v1144_v2 = vld [vmem:[%s1570_s1] ss:$16 sps:$4 sm:$0xff]   ;;  %v1167_v6 = vld [vmem:[%s1570_s1 + $0xc] ss:$16 sps:$4 sm:$0xff]  }
   0x2   :  { %206 = vmatprep.subr.bf16.mxu0 %v1137_v0  ;;  %v1150_v3 = vld [vmem:[%s1570_s1 + $0x24] ss:$16 sps:$4 sm:$0xff]   ;;  %v1156_v4 = vld [vmem:[%s1570_s1 + $0x20] ss:$16 sps:$4 sm:$0xff]   ;;  %v1172_v7 = vld [vmem:[%s1570_s1 + $0x8] ss:$16 sps:$4 sm:$0xff]   ;;  %247 = vmatprep.subr.bf16.mxu1 %v1167_v6 }
   0x3   :  { %207 = vmatpush1.bf16.msra.mxu0 %v1144_v2  ;;  %v1162_v5 = vld [vmem:[%s1570_s1 + $0x44] ss:$16 sps:$4 sm:$0xff]   ;;  %v1178_v8 = vld [vmem:[%s1570_s1 + $0x40] ss:$16 sps:$4 sm:$0xff]   ;;  %248 = vmatpush1.bf16.msra.mxu1 %v1172_v7  ;;  %v1191_v10 = vld [vmem:[%s1570_s1 + $0x2c] ss:$16 sps:$4 sm:$0xff]  }
   0x4   :  { %208 = vmatprep.subr.bf16.mxu0 %v1150_v3  ;;  %v1185_v9 = vld [vmem:[%s1570_s1 + $0x64] ss:$16 sps:$4 sm:$0xff]   ;;  %v1196_v11 = vld [vmem:[%s1570_s1 + $0x28] ss:$16 sps:$4 sm:$0xff]   ;;  %249 = vmatprep.subr.bf16.mxu1 %v1191_v10  ;;  %v1203_v12 = vld [vmem:[%s1570_s1 + $0x60] ss:$16 sps:$4 sm:$0xff]  }
   0x5   :  { %v1208_v13 = vld [vmem:[%s1570_s1 + $0x84] ss:$16 sps:$4 sm:$0xff]   ;;  %v1213_v14 = vld [vmem:[%s1570_s1 + $0x4c] ss:$16 sps:$4 sm:$0xff]   ;;  %v1220_v15 = vld [vmem:[%s1570_s1 + $0x48] ss:$16 sps:$4 sm:$0xff]  }
   0x6   :  { %v1226_v16 = vld [vmem:[%s1570_s1 + $0x6c] ss:$16 sps:$4 sm:$0xff]   ;;  %v1232_v17 = vld [vmem:[%s1570_s1 + $0x80] ss:$16 sps:$4 sm:$0xff]   ;;  %v1238_v18 = vld [vmem:[%s1570_s1 + $0xa4] ss:$16 sps:$4 sm:$0xff]  }
   0x7   :  { %209 = vmatpush1.bf16.msra.mxu0 %v1156_v4  ;;  %250 = vmatpush1.bf16.msra.mxu1 %v1196_v11  ;;  %v1244_v19 = vld [vmem:[%s1570_s1 + $0x68] ss:$16 sps:$4 sm:$0xff]   ;;  %v1250_v20 = vld [vmem:[%s1570_s1 + $0x8c] ss:$16 sps:$4 sm:$0xff]   ;;  %v1256_v21 = vld [vmem:[%s1570_s1 + $0xa0] ss:$16 sps:$4 sm:$0xff]  }
   0x8   :  { %210 = vmatprep.subr.bf16.mxu0 %v1162_v5  ;;  %251 = vmatprep.subr.bf16.mxu1 %v1213_v14  ;;  %v1261_v22 = vld [vmem:[%s1570_s1 + $0xc4] ss:$16 sps:$4 sm:$0xff]   ;;  %v1268_v23 = vld [vmem:[%s1570_s1 + $0x88] ss:$16 sps:$4 sm:$0xff]   ;;  %v1274_v24 = vld [vmem:[%s1570_s1 + $0xac] ss:$16 sps:$4 sm:$0xff]  }
   0x9   :  { %v1280_v25 = vld [vmem:[%s1570_s1 + $0xc0] ss:$16 sps:$4 sm:$0xff]   ;;  %v1286_v26 = vld [vmem:[%s1570_s1 + $0xe4] ss:$16 sps:$4 sm:$0xff]   ;;  %v1292_v27 = vld [vmem:[%s1570_s1 + $0xa8] ss:$16 sps:$4 sm:$0xff]  }
   0xa   :  { %v1298_v28 = vld [vmem:[%s1570_s1 + $0xcc] ss:$16 sps:$4 sm:$0xff]   ;;  %v1304_v29 = vld [vmem:[%s1570_s1 + $0xe0] ss:$16 sps:$4 sm:$0xff]   ;;  %v1311_v30 = vld [vmem:[%s1570_s1 + $0xc8] ss:$16 sps:$4 sm:$0xff]  }
   0xb   :  { %211 = vmatpush1.bf16.msra.mxu0 %v1178_v8  ;;  %252 = vmatpush1.bf16.msra.mxu1 %v1220_v15  ;;  %v1317_v31 = vld [vmem:[%s1570_s1 + $0xec] ss:$16 sps:$4 sm:$0xff]   ;;  %v1324_v32 = vld [vmem:[%s1570_s1 + $0xe8] ss:$16 sps:$4 sm:$0xff]   ;;  %v44_v34 = vld [vmem:[%s1571_s0] sm:$0xff] }
   0xc   :  { %212 = vmatprep.subr.bf16.mxu0 %v1185_v9  ;;  %253 = vmatprep.subr.bf16.mxu1 %v1226_v16  ;;  %v45_v45 = vld [vmem:[%s1571_s0 + $0x8] sm:$0xff] }
   0xf   :  { %213 = vmatpush1.bf16.msra.mxu0 %v1203_v12  ;;  %254 = vmatpush1.bf16.msra.mxu1 %v1244_v19 }
  0x10   :  { %214 = vmatprep.subr.bf16.mxu0 %v1208_v13  ;;  %255 = vmatprep.subr.bf16.mxu1 %v1250_v20 }
  0x13   :  { %215 = vmatpush1.bf16.msra.mxu0 %v1232_v17  ;;  %256 = vmatpush1.bf16.msra.mxu1 %v1268_v23 }
  0x14   :  { %216 = vmatprep.subr.bf16.mxu0 %v1238_v18  ;;  %257 = vmatprep.subr.bf16.mxu1 %v1274_v24 }
  0x17   :  { %217 = vmatpush1.bf16.msra.mxu0 %v1256_v21  ;;  %258 = vmatpush1.bf16.msra.mxu1 %v1292_v27 }
  0x18   :  { %218 = vmatprep.subr.bf16.mxu0 %v1261_v22  ;;  %259 = vmatprep.subr.bf16.mxu1 %v1298_v28 }
  0x1b   :  { %219 = vmatpush1.bf16.msra.mxu0 %v1280_v25  ;;  %260 = vmatpush1.bf16.msra.mxu1 %v1311_v30 }
  0x1c   :  { %220 = vmatprep.subr.bf16.mxu0 %v1286_v26  ;;  %261 = vmatprep.subr.bf16.mxu1 %v1317_v31 }
  0x1f   :  { %221 = vmatpush1.bf16.msra.mxu0 %v1304_v29  ;;  %262 = vmatpush1.bf16.msra.mxu1 %v1324_v32 }
  0x20   :  { %327 = vmatprep.subr.bf16.mxu0 %v1137_v0  ;;  %368 = vmatprep.subr.bf16.mxu1 %v1167_v6 }
  0x22   :  { %239 = vmatmul.mubr.bf16.vlgmr.msra.gmra.mrb[0].mxu0 %v1118_v1  ;;  %280 = vmatmul.mubr.bf16.vlgmr.msra.gmra.mrb[0].mxu1 %v1118_v1 }
  0x23   :  { %328 = vmatpush1.bf16.msra.mxu0 %v1144_v2  ;;  %359 = vmatprep.mubr.bf16.mxu0 %v1118_v1 }
  0x24   :  { %329 = vmatprep.subr.bf16.mxu0 %v1150_v3  ;;  %369 = vmatpush1.bf16.msra.mxu1 %v1172_v7 }
  0x25   :  { %370 = vmatprep.subr.bf16.mxu1 %v1191_v10  ;;  %400 = vmatprep.mubr.bf16.mxu1 %v1118_v1 }
  0x27   :  { %330 = vmatpush1.bf16.msra.mxu0 %v1156_v4 }
  0x28   :  { %331 = vmatprep.subr.bf16.mxu0 %v1162_v5  ;;  %371 = vmatpush1.bf16.msra.mxu1 %v1196_v11 }
  0x29   :  { %372 = vmatprep.subr.bf16.mxu1 %v1213_v14 }
  0x2b   :  { %332 = vmatpush1.bf16.msra.mxu0 %v1178_v8 }
  0x2c   :  { %333 = vmatprep.subr.bf16.mxu0 %v1185_v9  ;;  %373 = vmatpush1.bf16.msra.mxu1 %v1220_v15 }
  0x2d   :  { %374 = vmatprep.subr.bf16.mxu1 %v1226_v16 }
  0x2f   :  { %334 = vmatpush1.bf16.msra.mxu0 %v1203_v12 }
  0x30   :  { %335 = vmatprep.subr.bf16.mxu0 %v1208_v13  ;;  %375 = vmatpush1.bf16.msra.mxu1 %v1244_v19 }
  0x31   :  { %376 = vmatprep.subr.bf16.mxu1 %v1250_v20 }
  0x33   :  { %336 = vmatpush1.bf16.msra.mxu0 %v1232_v17 }
  0x34   :  { %337 = vmatprep.subr.bf16.mxu0 %v1238_v18  ;;  %377 = vmatpush1.bf16.msra.mxu1 %v1268_v23 }
  0x35   :  { %378 = vmatprep.subr.bf16.mxu1 %v1274_v24 }
  0x37   :  { %338 = vmatpush1.bf16.msra.mxu0 %v1256_v21 }
  0x38   :  { %339 = vmatprep.subr.bf16.mxu0 %v1261_v22  ;;  %379 = vmatpush1.bf16.msra.mxu1 %v1292_v27 }
  0x39   :  { %380 = vmatprep.subr.bf16.mxu1 %v1298_v28 }
  0x3b   :  { %340 = vmatpush1.bf16.msra.mxu0 %v1280_v25 }
  0x3c   :  { %341 = vmatprep.subr.bf16.mxu0 %v1286_v26  ;;  %381 = vmatpush1.bf16.msra.mxu1 %v1311_v30 }
  0x3d   :  { %382 = vmatprep.subr.bf16.mxu1 %v1317_v31 }
  0x3f   :  { %342 = vmatpush1.bf16.msra.mxu0 %v1304_v29 }
  0x40   :  { %449 = vmatprep.subr.bf16.mxu0 %v1137_v0  ;;  %383 = vmatpush1.bf16.msra.mxu1 %v1324_v32 }
  0x41   :  { %490 = vmatprep.subr.bf16.mxu1 %v1167_v6 }
  0xf5   :  { %v240_v33 = vpop.f32.mrb[0].mxu0  ;;  %v281_v40 = vpop.f32.mrb[0].mxu1 }
  0xf6   :  { %v242_v35 = vpop.f32.mrb[1].mxu0  ;;  %v283_v42 = vpop.f32.mrb[1].mxu1 }
  0xf7   :  { %v292_v36 = vcombine.low %v240_v33, %v242_v35  ;;  %v244_v37 = vpop.f32.mrb[2].mxu0  ;;  %v293_v43 = vcombine.low %v281_v40, %v283_v42  ;;  %v285_v44 = vpop.f32.mrb[2].mxu1  ;;  %v972_v35 = vld [vmem:[%s1571_s0 + $0x10] sm:$0xff] }
  0xf8   :  { %v245_v38 = vpop.f32.mrb[3].mxu0  ;;  %v286_v46 = vpop.f32.mrb[3].mxu1 }
  0xf9   :  { %v296_v39 = vadd.f32 %v292_v36, %v44_v34  ;;  %v297_v47 = vadd.f32 %v293_v43, %v45_v45  ;;  %v973_v46 = vld [vmem:[%s1571_s0 + $0x18] sm:$0xff] }
  0xfb   :  { %v970_v41 = vmul.f32 -1.442695, %v296_v39  ;;  %v311_v48 = vrot.slane %v297_v47, 4  ;;  %v971_v49 = vmul.f32 -1.442695, %v297_v47 }
  0xfd   :  { %1046 = vpow2.f32 %v970_v41 }
  0xfe   :  { %1048 = vtanh.f32 %v311_v48 }
  0xff   :  { %1050 = vpow2.f32 %v971_v49 }
 0x107   :  { %v1047_v50 = vpop.eup %1046 }
 0x108   :  { %v304_v51 = vadd.f32 1.0, %v1047_v50  ;;  %v1049_v52 = vpop.eup %1048 }
 0x109   :  { %v1051_v53 = vpop.eup %1050 }
 0x10a   :  { %1052 = vrcp.f32 %v304_v51  ;;  %v305_v57 = vadd.f32 1.0, %v1051_v53 }
 0x10c   :  { %1054 = vrcp.f32 %v305_v57 }
 0x114   :  { %v1053_v54 = vpop.eup %1052 }
 0x115   :  { %v315_v55 = vrot.slane %v1053_v54, 4  ;;  %v318_v56 = vmul.f32 %v1053_v54, %v1049_v52 }
 0x116   :  { %v1055_v60 = vpop.eup %1054 }
 0x117   :  { %v317_v58 = vmul.f32 0.0, %v315_v55 }
 0x119   :  { %v1372_v59 = vadd.f32 %v318_v56, %v317_v58 }
 0x11b   :  { %1056 = vtanh.f32 %v1372_v59 }
 0x125   :  { %v1057_v61 = vpop.eup %1056 }
 0x126   :  { %v321_v62 = vmul.f32 %v1057_v61, %v1055_v60 }
 0x128   :  { %v322_v63 = vpack.c.bf16 %v321_v62, %v321_v62 }
 0x12a   :  { %323 = vst [vmem:[%s1572_s2] sm:$0x3] %v322_v63  ;;  %360 = vmatmul.mubr.bf16.vlgmr.msra.gmra.mrb[4].mxu0 %v322_v63  ;;  %401 = vmatmul.mubr.bf16.vlgmr.msra.gmra.mrb[4].mxu1 %v322_v63 }
 0x12b   :  { %450 = vmatpush1.bf16.msra.mxu0 %v1144_v2  ;;  %491 = vmatpush1.bf16.msra.mxu1 %v1172_v7 }
 0x12c   :  { %451 = vmatprep.subr.bf16.mxu0 %v1150_v3  ;;  %492 = vmatprep.subr.bf16.mxu1 %v1191_v10 }
 0x12d   :  { %481 = vmatprep.mubr.bf16.mxu0 %v1118_v1  ;;  %522 = vmatprep.mubr.bf16.mxu1 %v1118_v1 }
 0x12f   :  { %452 = vmatpush1.bf16.msra.mxu0 %v1156_v4  ;;  %493 = vmatpush1.bf16.msra.mxu1 %v1196_v11 }
 0x130   :  { %453 = vmatprep.subr.bf16.mxu0 %v1162_v5  ;;  %494 = vmatprep.subr.bf16.mxu1 %v1213_v14 }
 0x133   :  { %454 = vmatpush1.bf16.msra.mxu0 %v1178_v8  ;;  %495 = vmatpush1.bf16.msra.mxu1 %v1220_v15 }
 0x134   :  { %455 = vmatprep.subr.bf16.mxu0 %v1185_v9  ;;  %496 = vmatprep.subr.bf16.mxu1 %v1226_v16 }
 0x137   :  { %456 = vmatpush1.bf16.msra.mxu0 %v1203_v12  ;;  %497 = vmatpush1.bf16.msra.mxu1 %v1244_v19 }
 0x138   :  { %457 = vmatprep.subr.bf16.mxu0 %v1208_v13  ;;  %498 = vmatprep.subr.bf16.mxu1 %v1250_v20 }
 0x13b   :  { %458 = vmatpush1.bf16.msra.mxu0 %v1232_v17  ;;  %499 = vmatpush1.bf16.msra.mxu1 %v1268_v23 }
 0x13c   :  { %459 = vmatprep.subr.bf16.mxu0 %v1238_v18  ;;  %500 = vmatprep.subr.bf16.mxu1 %v1274_v24 }
 0x13f   :  { %460 = vmatpush1.bf16.msra.mxu0 %v1256_v21  ;;  %501 = vmatpush1.bf16.msra.mxu1 %v1292_v27 }
 0x140   :  { %461 = vmatprep.subr.bf16.mxu0 %v1261_v22  ;;  %502 = vmatprep.subr.bf16.mxu1 %v1298_v28 }
 0x143   :  { %462 = vmatpush1.bf16.msra.mxu0 %v1280_v25  ;;  %503 = vmatpush1.bf16.msra.mxu1 %v1311_v30 }
 0x144   :  { %463 = vmatprep.subr.bf16.mxu0 %v1286_v26  ;;  %504 = vmatprep.subr.bf16.mxu1 %v1317_v31 }
 0x147   :  { %464 = vmatpush1.bf16.msra.mxu0 %v1304_v29  ;;  %505 = vmatpush1.bf16.msra.mxu1 %v1324_v32 }
 0x148   :  { %571 = vmatprep.subr.bf16.mxu0 %v1137_v0  ;;  %612 = vmatprep.subr.bf16.mxu1 %v1167_v6 }
 0x1fd   :  { %v361_v33 = vpop.f32.mrb[4].mxu0  ;;  %v402_v34 = vpop.f32.mrb[4].mxu1 }
 0x1fe   :  { %v363_v36 = vpop.f32.mrb[5].mxu0  ;;  %v404_v37 = vpop.f32.mrb[5].mxu1 }
 0x1ff   :  { %v413_v38 = vcombine.low %v361_v33, %v363_v36  ;;  %v414_v39 = vcombine.low %v402_v34, %v404_v37  ;;  %v365_v40 = vpop.f32.mrb[6].mxu0  ;;  %v406_v41 = vpop.f32.mrb[6].mxu1 }
 0x200   :  { %v366_v42 = vpop.f32.mrb[7].mxu0  ;;  %v407_v43 = vpop.f32.mrb[7].mxu1 }
 0x201   :  { %v417_v44 = vadd.f32 %v972_v35, %v413_v38  ;;  %v418_v47 = vadd.f32 %v973_v46, %v414_v39  ;;  %v977_v35 = vld [vmem:[%s1571_s0 + $0x20] sm:$0xff]  ;;  %v978_v46 = vld [vmem:[%s1571_s0 + $0x28] sm:$0xff] }
 0x203   :  { %v974_v45 = vmul.f32 -1.442695, %v417_v44  ;;  %v975_v48 = vmul.f32 -1.442695, %v418_v47  ;;  %v432_v49 = vrot.slane %v418_v47, 4 }
 0x205   :  { %1058 = vpow2.f32 %v974_v45 }
 0x206   :  { %1060 = vpow2.f32 %v975_v48 }
 0x207   :  { %1062 = vtanh.f32 %v432_v49 }
 0x20f   :  { %v1059_v50 = vpop.eup %1058 }
 0x210   :  { %v425_v51 = vadd.f32 1.0, %v1059_v50  ;;  %v1061_v52 = vpop.eup %1060 }
 0x211   :  { %v1063_v53 = vpop.eup %1062  ;;  %v426_v57 = vadd.f32 1.0, %v1061_v52 }
 0x212   :  { %1064 = vrcp.f32 %v425_v51 }
 0x213   :  { %1066 = vrcp.f32 %v426_v57 }
 0x21c   :  { %v1065_v54 = vpop.eup %1064 }
 0x21d   :  { %v436_v55 = vrot.slane %v1065_v54, 4  ;;  %v439_v56 = vmul.f32 %v1065_v54, %v1063_v53  ;;  %v1067_v61 = vpop.eup %1066 }
 0x21f   :  { %v438_v58 = vmul.f32 %v436_v55, %v1372_v59 }
 0x221   :  { %v1419_v60 = vadd.f32 %v439_v56, %v438_v58 }
 0x223   :  { %1068 = vtanh.f32 %v1419_v60 }
 0x22d   :  { %v1069_v62 = vpop.eup %1068 }
 0x22e   :  { %v442_v63 = vmul.f32 %v1069_v62, %v1067_v61 }
 0x230   :  { %v443_v33 = vpack.c.bf16 %v442_v63, %v442_v63 }
 0x232   :  { %976 = vst [vmem:[%s1572_s2 + $0x2] sm:$0x3] %v443_v33  ;;  %482 = vmatmul.mubr.bf16.vlgmr.msra.gmra.mrb[8].mxu0 %v443_v33  ;;  %523 = vmatmul.mubr.bf16.vlgmr.msra.gmra.mrb[8].mxu1 %v443_v33 }
 0x233   :  { %572 = vmatpush1.bf16.msra.mxu0 %v1144_v2  ;;  %613 = vmatpush1.bf16.msra.mxu1 %v1172_v7 }
 0x234   :  { %573 = vmatprep.subr.bf16.mxu0 %v1150_v3  ;;  %614 = vmatprep.subr.bf16.mxu1 %v1191_v10 }
 0x235   :  { %603 = vmatprep.mubr.bf16.mxu0 %v1118_v1  ;;  %644 = vmatprep.mubr.bf16.mxu1 %v1118_v1 }
 0x237   :  { %574 = vmatpush1.bf16.msra.mxu0 %v1156_v4  ;;  %615 = vmatpush1.bf16.msra.mxu1 %v1196_v11 }
 0x238   :  { %575 = vmatprep.subr.bf16.mxu0 %v1162_v5  ;;  %616 = vmatprep.subr.bf16.mxu1 %v1213_v14 }
 0x23b   :  { %576 = vmatpush1.bf16.msra.mxu0 %v1178_v8  ;;  %617 = vmatpush1.bf16.msra.mxu1 %v1220_v15 }
 0x23c   :  { %577 = vmatprep.subr.bf16.mxu0 %v1185_v9  ;;  %618 = vmatprep.subr.bf16.mxu1 %v1226_v16 }
 0x23f   :  { %578 = vmatpush1.bf16.msra.mxu0 %v1203_v12  ;;  %619 = vmatpush1.bf16.msra.mxu1 %v1244_v19 }
 0x240   :  { %579 = vmatprep.subr.bf16.mxu0 %v1208_v13  ;;  %620 = vmatprep.subr.bf16.mxu1 %v1250_v20 }
 0x243   :  { %580 = vmatpush1.bf16.msra.mxu0 %v1232_v17  ;;  %621 = vmatpush1.bf16.msra.mxu1 %v1268_v23 }
 0x244   :  { %581 = vmatprep.subr.bf16.mxu0 %v1238_v18  ;;  %622 = vmatprep.subr.bf16.mxu1 %v1274_v24 }
 0x247   :  { %582 = vmatpush1.bf16.msra.mxu0 %v1256_v21  ;;  %623 = vmatpush1.bf16.msra.mxu1 %v1292_v27 }
 0x248   :  { %583 = vmatprep.subr.bf16.mxu0 %v1261_v22  ;;  %624 = vmatprep.subr.bf16.mxu1 %v1298_v28 }
 0x24b   :  { %584 = vmatpush1.bf16.msra.mxu0 %v1280_v25  ;;  %625 = vmatpush1.bf16.msra.mxu1 %v1311_v30 }
 0x24c   :  { %585 = vmatprep.subr.bf16.mxu0 %v1286_v26  ;;  %626 = vmatprep.subr.bf16.mxu1 %v1317_v31 }
 0x24f   :  { %586 = vmatpush1.bf16.msra.mxu0 %v1304_v29  ;;  %627 = vmatpush1.bf16.msra.mxu1 %v1324_v32 }
 0x250   :  { %693 = vmatprep.subr.bf16.mxu0 %v1137_v0  ;;  %734 = vmatprep.subr.bf16.mxu1 %v1167_v6 }
 0x305   :  { %v483_v59 = vpop.f32.mrb[8].mxu0  ;;  %v524_v34 = vpop.f32.mrb[8].mxu1 }
 0x306   :  { %v485_v36 = vpop.f32.mrb[9].mxu0  ;;  %v526_v37 = vpop.f32.mrb[9].mxu1 }
 0x307   :  { %v535_v38 = vcombine.low %v483_v59, %v485_v36  ;;  %v536_v39 = vcombine.low %v524_v34, %v526_v37  ;;  %v487_v40 = vpop.f32.mrb[10].mxu0  ;;  %v528_v41 = vpop.f32.mrb[10].mxu1 }
 0x308   :  { %v488_v42 = vpop.f32.mrb[11].mxu0  ;;  %v529_v43 = vpop.f32.mrb[11].mxu1 }
 0x309   :  { %v539_v44 = vadd.f32 %v977_v35, %v535_v38  ;;  %v540_v47 = vadd.f32 %v978_v46, %v536_v39  ;;  %v982_v35 = vld [vmem:[%s1571_s0 + $0x30] sm:$0xff] }
 0x30b   :  { %v979_v45 = vmul.f32 -1.442695, %v539_v44  ;;  %v980_v48 = vmul.f32 -1.442695, %v540_v47  ;;  %v554_v49 = vrot.slane %v540_v47, 4 }
 0x30d   :  { %1070 = vpow2.f32 %v979_v45 }
 0x30e   :  { %1072 = vpow2.f32 %v980_v48 }
 0x30f   :  { %1074 = vtanh.f32 %v554_v49 }
 0x317   :  { %v1071_v50 = vpop.eup %1070 }
 0x318   :  { %v547_v51 = vadd.f32 1.0, %v1071_v50  ;;  %v1073_v52 = vpop.eup %1072 }
 0x319   :  { %v1075_v53 = vpop.eup %1074  ;;  %v548_v57 = vadd.f32 1.0, %v1073_v52 }
 0x31a   :  { %1076 = vrcp.f32 %v547_v51 }
 0x31b   :  { %1078 = vrcp.f32 %v548_v57 }
 0x324   :  { %v1077_v54 = vpop.eup %1076 }
 0x325   :  { %v558_v55 = vrot.slane %v1077_v54, 4  ;;  %v561_v56 = vmul.f32 %v1077_v54, %v1075_v53  ;;  %v1079_v62 = vpop.eup %1078 }
 0x327   :  { %v560_v58 = vmul.f32 %v558_v55, %v1419_v60 }
 0x329   :  { %v1466_v61 = vadd.f32 %v561_v56, %v560_v58 }
 0x32b   :  { %1080 = vtanh.f32 %v1466_v61 }
 0x335   :  { %v1081_v63 = vpop.eup %1080 }
 0x336   :  { %v564_v33 = vmul.f32 %v1081_v63, %v1079_v62 }
 0x338   :  { %v565_v59 = vpack.c.bf16 %v564_v33, %v564_v33 }
 0x33a   :  { %981 = vst [vmem:[%s1572_s2 + $0x4] sm:$0x3] %v565_v59  ;;  %604 = vmatmul.mubr.bf16.vlgmr.msra.gmra.mrb[12].mxu0 %v565_v59  ;;  %645 = vmatmul.mubr.bf16.vlgmr.msra.gmra.mrb[12].mxu1 %v565_v59 }
 0x33b   :  { %694 = vmatpush1.bf16.msra.mxu0 %v1144_v2  ;;  %735 = vmatpush1.bf16.msra.mxu1 %v1172_v7 }
 0x33c   :  { %695 = vmatprep.subr.bf16.mxu0 %v1150_v3  ;;  %736 = vmatprep.subr.bf16.mxu1 %v1191_v10 }
 0x33d   :  { %725 = vmatprep.mubr.bf16.mxu0 %v1118_v1  ;;  %766 = vmatprep.mubr.bf16.mxu1 %v1118_v1 }
 0x33f   :  { %696 = vmatpush1.bf16.msra.mxu0 %v1156_v4  ;;  %737 = vmatpush1.bf16.msra.mxu1 %v1196_v11 }
 0x340   :  { %697 = vmatprep.subr.bf16.mxu0 %v1162_v5  ;;  %738 = vmatprep.subr.bf16.mxu1 %v1213_v14 }
 0x343   :  { %698 = vmatpush1.bf16.msra.mxu0 %v1178_v8  ;;  %739 = vmatpush1.bf16.msra.mxu1 %v1220_v15 }
 0x344   :  { %699 = vmatprep.subr.bf16.mxu0 %v1185_v9  ;;  %740 = vmatprep.subr.bf16.mxu1 %v1226_v16 }
 0x347   :  { %700 = vmatpush1.bf16.msra.mxu0 %v1203_v12  ;;  %741 = vmatpush1.bf16.msra.mxu1 %v1244_v19 }
 0x348   :  { %701 = vmatprep.subr.bf16.mxu0 %v1208_v13  ;;  %742 = vmatprep.subr.bf16.mxu1 %v1250_v20 }
 0x34b   :  { %702 = vmatpush1.bf16.msra.mxu0 %v1232_v17  ;;  %743 = vmatpush1.bf16.msra.mxu1 %v1268_v23 }
 0x34c   :  { %703 = vmatprep.subr.bf16.mxu0 %v1238_v18  ;;  %744 = vmatprep.subr.bf16.mxu1 %v1274_v24 }
 0x34f   :  { %704 = vmatpush1.bf16.msra.mxu0 %v1256_v21  ;;  %745 = vmatpush1.bf16.msra.mxu1 %v1292_v27 }
 0x350   :  { %705 = vmatprep.subr.bf16.mxu0 %v1261_v22  ;;  %746 = vmatprep.subr.bf16.mxu1 %v1298_v28 }
 0x353   :  { %706 = vmatpush1.bf16.msra.mxu0 %v1280_v25  ;;  %747 = vmatpush1.bf16.msra.mxu1 %v1311_v30 }
 0x354   :  { %707 = vmatprep.subr.bf16.mxu0 %v1286_v26  ;;  %748 = vmatprep.subr.bf16.mxu1 %v1317_v31 }
 0x357   :  { %708 = vmatpush1.bf16.msra.mxu0 %v1304_v29  ;;  %749 = vmatpush1.bf16.msra.mxu1 %v1324_v32 }
 0x358   :  { %815 = vmatprep.subr.bf16.mxu0 %v1137_v0  ;;  %856 = vmatprep.subr.bf16.mxu1 %v1167_v6  ;;  %v983_v0 = vld [vmem:[%s1571_s0 + $0x38] sm:$0xff] }
 0x40d   :  { %v605_v60 = vpop.f32.mrb[12].mxu0  ;;  %v646_v34 = vpop.f32.mrb[12].mxu1 }
 0x40e   :  { %v607_v36 = vpop.f32.mrb[13].mxu0  ;;  %v648_v37 = vpop.f32.mrb[13].mxu1 }
 0x40f   :  { %v657_v38 = vcombine.low %v605_v60, %v607_v36  ;;  %v658_v39 = vcombine.low %v646_v34, %v648_v37  ;;  %v609_v40 = vpop.f32.mrb[14].mxu0  ;;  %v650_v41 = vpop.f32.mrb[14].mxu1  ;;  %v992_v60 = vld [vmem:[%s1571_s0 + $0x50] sm:$0xff] }
 0x410   :  { %v610_v42 = vpop.f32.mrb[15].mxu0  ;;  %v651_v43 = vpop.f32.mrb[15].mxu1 }
 0x411   :  { %v661_v44 = vadd.f32 %v982_v35, %v657_v38  ;;  %v662_v6 = vadd.f32 %v983_v0, %v658_v39 }
 0x413   :  { %v984_v45 = vmul.f32 -1.442695, %v661_v44  ;;  %v985_v46 = vmul.f32 -1.442695, %v662_v6  ;;  %v676_v47 = vrot.slane %v662_v6, 4  ;;  %v993_v44 = vld [vmem:[%s1571_s0 + $0x58] sm:$0xff] }
 0x415   :  { %1082 = vpow2.f32 %v984_v45 }
 0x416   :  { %1084 = vpow2.f32 %v985_v46 }
 0x417   :  { %1086 = vtanh.f32 %v676_v47 }
 0x41f   :  { %v1083_v48 = vpop.eup %1082 }
 0x420   :  { %v669_v49 = vadd.f32 1.0, %v1083_v48  ;;  %v1085_v50 = vpop.eup %1084 }
 0x421   :  { %v1087_v51 = vpop.eup %1086  ;;  %v670_v55 = vadd.f32 1.0, %v1085_v50 }
 0x422   :  { %1088 = vrcp.f32 %v669_v49 }
 0x423   :  { %1090 = vrcp.f32 %v670_v55 }
 0x42c   :  { %v1089_v52 = vpop.eup %1088 }
 0x42d   :  { %v680_v53 = vrot.slane %v1089_v52, 4  ;;  %v683_v54 = vmul.f32 %v1089_v52, %v1087_v51  ;;  %v1091_v58 = vpop.eup %1090 }
 0x42f   :  { %v682_v56 = vmul.f32 %v680_v53, %v1466_v61 }
 0x431   :  { %v1513_v57 = vadd.f32 %v683_v54, %v682_v56 }
 0x433   :  { %1092 = vtanh.f32 %v1513_v57 }
 0x43d   :  { %v1093_v62 = vpop.eup %1092 }
 0x43e   :  { %v686_v63 = vmul.f32 %v1093_v62, %v1091_v58 }
 0x440   :  { %v687_v33 = vpack.c.bf16 %v686_v63, %v686_v63 }
 0x442   :  { %986 = vst [vmem:[%s1572_s2 + $0x6] sm:$0x3] %v687_v33  ;;  %726 = vmatmul.mubr.bf16.vlgmr.msra.gmra.mrb[16].mxu0 %v687_v33  ;;  %767 = vmatmul.mubr.bf16.vlgmr.msra.gmra.mrb[16].mxu1 %v687_v33 }
 0x443   :  { %816 = vmatpush1.bf16.msra.mxu0 %v1144_v2  ;;  %857 = vmatpush1.bf16.msra.mxu1 %v1172_v7 }
 0x444   :  { %817 = vmatprep.subr.bf16.mxu0 %v1150_v3  ;;  %858 = vmatprep.subr.bf16.mxu1 %v1191_v10  ;;  %v987_v3 = vld [vmem:[%s1571_s0 + $0x40] sm:$0xff] }
 0x445   :  { %847 = vmatprep.mubr.bf16.mxu0 %v1118_v1  ;;  %888 = vmatprep.mubr.bf16.mxu1 %v1118_v1 }
 0x447   :  { %818 = vmatpush1.bf16.msra.mxu0 %v1156_v4  ;;  %859 = vmatpush1.bf16.msra.mxu1 %v1196_v11 }
 0x448   :  { %819 = vmatprep.subr.bf16.mxu0 %v1162_v5  ;;  %860 = vmatprep.subr.bf16.mxu1 %v1213_v14 }
 0x44b   :  { %820 = vmatpush1.bf16.msra.mxu0 %v1178_v8  ;;  %861 = vmatpush1.bf16.msra.mxu1 %v1220_v15  ;;  %v988_v15 = vld [vmem:[%s1571_s0 + $0x48] sm:$0xff] }
 0x44c   :  { %821 = vmatprep.subr.bf16.mxu0 %v1185_v9  ;;  %862 = vmatprep.subr.bf16.mxu1 %v1226_v16 }
 0x44f   :  { %822 = vmatpush1.bf16.msra.mxu0 %v1203_v12  ;;  %863 = vmatpush1.bf16.msra.mxu1 %v1244_v19 }
 0x450   :  { %823 = vmatprep.subr.bf16.mxu0 %v1208_v13  ;;  %864 = vmatprep.subr.bf16.mxu1 %v1250_v20 }
 0x453   :  { %824 = vmatpush1.bf16.msra.mxu0 %v1232_v17  ;;  %865 = vmatpush1.bf16.msra.mxu1 %v1268_v23 }
 0x454   :  { %825 = vmatprep.subr.bf16.mxu0 %v1238_v18  ;;  %866 = vmatprep.subr.bf16.mxu1 %v1274_v24 }
 0x457   :  { %826 = vmatpush1.bf16.msra.mxu0 %v1256_v21  ;;  %867 = vmatpush1.bf16.msra.mxu1 %v1292_v27 }
 0x458   :  { %827 = vmatprep.subr.bf16.mxu0 %v1261_v22  ;;  %868 = vmatprep.subr.bf16.mxu1 %v1298_v28 }
 0x45b   :  { %828 = vmatpush1.bf16.msra.mxu0 %v1280_v25  ;;  %869 = vmatpush1.bf16.msra.mxu1 %v1311_v30 }
 0x45c   :  { %829 = vmatprep.subr.bf16.mxu0 %v1286_v26  ;;  %870 = vmatprep.subr.bf16.mxu1 %v1317_v31 }
 0x45f   :  { %830 = vmatpush1.bf16.msra.mxu0 %v1304_v29  ;;  %871 = vmatpush1.bf16.msra.mxu1 %v1324_v32 }
 0x515   :  { %v727_v1 = vpop.f32.mrb[16].mxu0  ;;  %v768_v2 = vpop.f32.mrb[16].mxu1 }
 0x516   :  { %v729_v4 = vpop.f32.mrb[17].mxu0  ;;  %v770_v5 = vpop.f32.mrb[17].mxu1 }
 0x517   :  { %v779_v7 = vcombine.low %v727_v1, %v729_v4  ;;  %v780_v8 = vcombine.low %v768_v2, %v770_v5  ;;  %v731_v9 = vpop.f32.mrb[18].mxu0  ;;  %v772_v10 = vpop.f32.mrb[18].mxu1 }
 0x518   :  { %v732_v11 = vpop.f32.mrb[19].mxu0  ;;  %v773_v12 = vpop.f32.mrb[19].mxu1 }
 0x519   :  { %v783_v13 = vadd.f32 %v987_v3, %v779_v7  ;;  %v784_v16 = vadd.f32 %v988_v15, %v780_v8 }
 0x51b   :  { %v989_v14 = vmul.f32 -1.442695, %v783_v13  ;;  %v990_v17 = vmul.f32 -1.442695, %v784_v16  ;;  %v798_v18 = vrot.slane %v784_v16, 4 }
 0x51d   :  { %1094 = vpow2.f32 %v989_v14 }
 0x51e   :  { %1096 = vpow2.f32 %v990_v17 }
 0x51f   :  { %1098 = vtanh.f32 %v798_v18 }
 0x527   :  { %v1095_v19 = vpop.eup %1094 }
 0x528   :  { %v791_v20 = vadd.f32 1.0, %v1095_v19  ;;  %v1097_v21 = vpop.eup %1096 }
 0x529   :  { %v1099_v22 = vpop.eup %1098  ;;  %v792_v26 = vadd.f32 1.0, %v1097_v21 }
 0x52a   :  { %1100 = vrcp.f32 %v791_v20 }
 0x52b   :  { %1102 = vrcp.f32 %v792_v26 }
 0x534   :  { %v1101_v23 = vpop.eup %1100 }
 0x535   :  { %v802_v24 = vrot.slane %v1101_v23, 4  ;;  %v805_v25 = vmul.f32 %v1101_v23, %v1099_v22  ;;  %v1103_v29 = vpop.eup %1102 }
 0x537   :  { %v804_v27 = vmul.f32 %v802_v24, %v1513_v57 }
 0x539   :  { %v806_v28 = vadd.f32 %v805_v25, %v804_v27 }
 0x53b   :  { %1104 = vtanh.f32 %v806_v28 }
 0x545   :  { %v1105_v30 = vpop.eup %1104 }
 0x546   :  { %v808_v31 = vmul.f32 %v1105_v30, %v1103_v29 }
 0x548   :  { %v809_v32 = vpack.c.bf16 %v808_v31, %v808_v31 }
 0x54a   :  { %991 = vst [vmem:[%s1572_s2 + $0x8] sm:$0x3] %v809_v32  ;;  %848 = vmatmul.mubr.bf16.vlgmr.msra.gmra.mrb[20].mxu0 %v809_v32  ;;  %889 = vmatmul.mubr.bf16.vlgmr.msra.gmra.mrb[20].mxu1 %v809_v32 }
 0x61d   :  { %v849_v61 = vpop.f32.mrb[20].mxu0  ;;  %v890_v59 = vpop.f32.mrb[20].mxu1 }
 0x61e   :  { %v851_v34 = vpop.f32.mrb[21].mxu0  ;;  %v892_v35 = vpop.f32.mrb[21].mxu1 }
 0x61f   :  { %v901_v36 = vcombine.low %v849_v61, %v851_v34  ;;  %v902_v37 = vcombine.low %v890_v59, %v892_v35  ;;  %v853_v38 = vpop.f32.mrb[22].mxu0  ;;  %v894_v39 = vpop.f32.mrb[22].mxu1 }
 0x620   :  { %v854_v40 = vpop.f32.mrb[23].mxu0  ;;  %v895_v41 = vpop.f32.mrb[23].mxu1 }
 0x621   :  { %v905_v42 = vadd.f32 %v992_v60, %v901_v36  ;;  %v906_v45 = vadd.f32 %v993_v44, %v902_v37 }
 0x623   :  { %v994_v43 = vmul.f32 -1.442695, %v905_v42  ;;  %v995_v0 = vmul.f32 -1.442695, %v906_v45  ;;  %v920_v6 = vrot.slane %v906_v45, 4 }
 0x625   :  { %1106 = vpow2.f32 %v994_v43 }
 0x626   :  { %1108 = vpow2.f32 %v995_v0 }
 0x627   :  { %1110 = vtanh.f32 %v920_v6 }
 0x62f   :  { %v1107_v46 = vpop.eup %1106 }
 0x630   :  { %v913_v47 = vadd.f32 1.0, %v1107_v46  ;;  %v1109_v48 = vpop.eup %1108 }
 0x631   :  { %v1111_v49 = vpop.eup %1110  ;;  %v914_v53 = vadd.f32 1.0, %v1109_v48 }
 0x632   :  { %1112 = vrcp.f32 %v913_v47 }
 0x633   :  { %1114 = vrcp.f32 %v914_v53 }
 0x63c   :  { %v1113_v50 = vpop.eup %1112 }
 0x63d   :  { %v924_v51 = vrot.slane %v1113_v50, 4  ;;  %v927_v52 = vmul.f32 %v1113_v50, %v1111_v49  ;;  %v1115_v56 = vpop.eup %1114 }
 0x63f   :  { %v926_v54 = vmul.f32 %v924_v51, %v806_v28 }
 0x641   :  { %v928_v55 = vadd.f32 %v927_v52, %v926_v54 }
 0x643   :  { %1116 = vtanh.f32 %v928_v55 }
 0x64d   :  { %v1117_v57 = vpop.eup %1116 }
 0x64e   :  { %v930_v58 = vmul.f32 %v1117_v57, %v1115_v56 }
 0x650   :  { %v931_v62 = vpack.c.bf16 %v930_v58, %v930_v58 }
 0x652   :  { %996 = vst [vmem:[%s1572_s2 + $0xa] sm:$0x3] %v931_v62 }

</bundles_post_ra>
